<compile_context>
chip_gen: v5e
topology: v5e:2x2
jax: 0.10.0
libtpu: 0.0.40
codegen_flags: <defaults>
</compile_context>

<pallas_src>
import functools

import jax
import jax.numpy as jnp
from jax.experimental import pallas as pl
from jax.experimental.pallas import tpu as pltpu

LANE = 128     # last-dim tiling unit
SUBLANE = 8    # second-to-last-dim tiling unit


def _round_up(n, m):
    return ((n + m - 1) // m) * m


# ---------------------------------------------------------------------------
# Kernel
# ---------------------------------------------------------------------------
def _make_kernel(compute_dtype):
    exact_f32 = (jnp.dtype(compute_dtype) == jnp.dtype(jnp.float32))

    def mlp_kernel(x_ref,
                   w1_ref, b1_ref,
                   w2_ref, b2_ref,
                   w3_ref, b3_ref,
                   w4_ref, b4_ref,
                   o_ref):
        """Four fused Linear layers on one (TB, D_pad) batch tile."""
        h = x_ref[...].astype(compute_dtype)
        layers = ((w1_ref, b1_ref), (w2_ref, b2_ref),
                  (w3_ref, b3_ref), (w4_ref, b4_ref))
        for li, (w_ref, b_ref) in enumerate(layers):
            if exact_f32:
                acc = jax.lax.dot_general(
                    h, w_ref[...],
                    dimension_numbers=(((1,), (0,)), ((), ())),
                    precision=jax.lax.Precision.HIGHEST,
                    preferred_element_type=jnp.float32)
            else:
                acc = jnp.dot(h, w_ref[...],
                              preferred_element_type=jnp.float32)
            acc = acc + b_ref[...]            # bias add in f32
            if li < 3:
                h = acc.astype(compute_dtype)  # keep live intermediate narrow
            else:
                h = acc                        # final layer stays f32
        o_ref[...] = h.astype(o_ref.dtype)

    return mlp_kernel


# ---------------------------------------------------------------------------
# Parameter preparation (done once; weights are static across calls)
# ---------------------------------------------------------------------------
def prepare_params(params, dim, compute_dtype=jnp.bfloat16):
    """Pad weights/biases to lane-aligned (D_pad, D_pad)/(1, D_pad) once."""
    D_pad = _round_up(max(dim, LANE), LANE)
    flat = []
    for (w, b) in params:
        w_p = jnp.zeros((D_pad, D_pad), compute_dtype)
        w_p = w_p.at[:dim, :dim].set(w.astype(compute_dtype))
        b_p = jnp.zeros((1, D_pad), jnp.float32)
        b_p = b_p.at[:, :dim].set(b.reshape(1, dim).astype(jnp.float32))
        flat += [w_p, b_p]
    return tuple(flat), D_pad


def _resident_spec(shape):
    """Grid-invariant block (DMA'd once); single-buffered if supported."""
    try:
        return pl.BlockSpec(shape, lambda i: (0, 0),
                            pipeline_mode=pl.Buffered(1))
    except TypeError:  # older jax without pipeline_mode kwarg
        return pl.BlockSpec(shape, lambda i: (0, 0))


def _vmem_cap_bytes():
    try:
        cap = pltpu.get_tpu_info().vmem_capacity_bytes
        return int(0.85 * cap)          # headroom for Mosaic internal scratch
    except Exception:
        return 64 << 20                  # conservative (fits v7x)


# ---------------------------------------------------------------------------
# Forward pass
# ---------------------------------------------------------------------------
def mlp_forward(x, flat_params, dim, D_pad, *,
                compute_dtype=jnp.bfloat16, out_dtype=None, batch_tile=256):
    """x: [B, dim]; flat_params: 8 pre-padded arrays (w1,b1,...,w4,b4)."""
    B, D = x.shape
    assert D == dim
    out_dtype = out_dtype if out_dtype is not None else x.dtype
    itemsize = jnp.dtype(compute_dtype).itemsize

    # --- batch tile: >= 2 grid tiles when B allows (v7x has 2 TensorCores),
    #     without rounding B up to a fixed 256 multiple.
    if B <= 2 * batch_tile:
        TB = _round_up(max(pl.cdiv(B, 2), SUBLANE), SUBLANE)
    else:
        TB = batch_tile
    TB = min(TB, _round_up(max(B, SUBLANE), SUBLANE))
    B_pad = _round_up(B, TB)
    n_tiles = B_pad // TB

    # --- pad the activation only if needed (hot-path copy elision).
    x_in = x.astype(compute_dtype)
    needs_pad = (D != D_pad) or (B != B_pad)
    if needs_pad:
        x_in = jnp.zeros((B_pad, D_pad), compute_dtype).at[:B, :D].set(x_in)

    # --- block specs
    x_spec = pl.BlockSpec((TB, D_pad), lambda i: (i, 0))
    o_spec = pl.BlockSpec((TB, D_pad), lambda i: (i, 0))
    in_specs = [x_spec]
    for _ in range(4):
        in_specs.append(_resident_spec((D_pad, D_pad)))  # weight, resident
        in_specs.append(_resident_spec((1, D_pad)))      # bias,   resident

    # --- explicit, truthful VMEM budget (weights single-buffered).
    resident = 4 * (D_pad * D_pad * itemsize + D_pad * 4)
    streamed = 2 * TB * D_pad * itemsize \
        + 2 * TB * D_pad * jnp.dtype(out_dtype).itemsize
    temps = 2 * TB * D_pad * 4                      # f32 accumulator headroom
    needed = resident + streamed + temps
    vmem_limit = int(min(_vmem_cap_bytes(),
                         max(int(1.5 * needed), 16 << 20)))
    # TODO(synk): if `needed` exceeds the per-generation cap, dispatch to a
    #             K/N-tiled per-layer pipeline instead of the resident plan.

    cost = pl.CostEstimate(
        flops=int(2 * B_pad * D_pad * D_pad * 4),
        transcendentals=0,
        bytes_accessed=int(B_pad * D_pad * itemsize
                           + B_pad * D_pad * jnp.dtype(out_dtype).itemsize
                           + resident),
    )

    out = pl.pallas_call(
        _make_kernel(compute_dtype),
        out_shape=jax.ShapeDtypeStruct((B_pad, D_pad), out_dtype),
        grid=(n_tiles,),
        in_specs=in_specs,
        out_specs=o_spec,
        compiler_params=pltpu.CompilerParams(
            dimension_semantics=("parallel",),   # megacore: split batch tiles
            vmem_limit_bytes=vmem_limit,
        ),
        cost_estimate=cost,
    )(x_in, *flat_params)

    if needs_pad:
        out = out[:B, :D]
    return out


# ---------------------------------------------------------------------------
# Reference & init
# ---------------------------------------------------------------------------
def mlp_reference(x, params):
    h = x
    for (w, b) in params:
        h = h @ w + b
    return h


def init_params(key, dim, n_layers=4):
    """Deterministic init mimicking nn.Linear's U(-1/sqrt(dim), 1/sqrt(dim))."""
    params = []
    bound = 1.0 / jnp.sqrt(jnp.float32(dim))
    for _ in range(n_layers):
        key, kw, kb = jax.random.split(key, 3)
        # PyTorch stores weight as [out, in]; we store transposed [in, out].
        w = jax.random.uniform(kw, (dim, dim), jnp.float32, -bound, bound)
        b = jax.random.uniform(kb, (1, dim), jnp.float32, -bound, bound)
        params.append((w, b))
    return params


if __name__ == "__main__":
    key = jax.random.PRNGKey(0)
    batch, dim = 8, 32

    key, kx = jax.random.split(key)
    x = jax.random.normal(kx, (batch, dim), jnp.float32)
    params = init_params(key, dim)

    ref = mlp_reference(x, params)

    # Exact-f32 path: must match the reference tightly.
    flat_f32, D_pad = prepare_params(params, dim, compute_dtype=jnp.float32)
    out_f32 = jax.block_until_ready(
        mlp_forward(x, flat_f32, dim, D_pad, compute_dtype=jnp.float32))
    assert out_f32.shape == (batch, dim)
    assert jnp.allclose(out_f32, ref, atol=1e-4, rtol=1e-4), \
        "f32 mismatch vs reference"

    # bf16 compute / f32 accumulate path (the MXU fast path): loose check.
    flat_bf16, D_pad = prepare_params(params, dim, compute_dtype=jnp.bfloat16)
    out_bf16 = jax.block_until_ready(
        mlp_forward(x, flat_bf16, dim, D_pad, compute_dtype=jnp.bfloat16))
    assert out_bf16.shape == (batch, dim)
    assert float(jnp.max(jnp.abs(out_bf16 - ref))) < 1e-1, \
        "bf16 path drifted too far"

    print("KERNEL_OK")
</pallas_src>

<mosaic_0001>
module attributes {stable_mosaic.version = 11 : i64} {
  func.func @mlp_kernel(%arg0: i32, %arg1: memref<8x128xf32, #tpu.memory_space<vmem>>, %arg2: memref<128x128xf32, #tpu.memory_space<vmem>>, %arg3: memref<1x128xf32, #tpu.memory_space<vmem>>, %arg4: memref<128x128xf32, #tpu.memory_space<vmem>>, %arg5: memref<1x128xf32, #tpu.memory_space<vmem>>, %arg6: memref<128x128xf32, #tpu.memory_space<vmem>>, %arg7: memref<1x128xf32, #tpu.memory_space<vmem>>, %arg8: memref<128x128xf32, #tpu.memory_space<vmem>>, %arg9: memref<1x128xf32, #tpu.memory_space<vmem>>, %arg10: memref<8x128xf32, #tpu.memory_space<vmem>>) attributes {dimension_semantics = [#tpu.dimension_semantics<parallel>], iteration_bounds = array<i64: 1>, scalar_prefetch = 0 : i64, scratch_operands = 0 : i64, tpu.core_type = #tpu.core_type<tc>, window_params = [{transform_indices = @transform_0, window_bounds = array<i64: 8, 128>}, {pipeline_mode = #tpu.pipeline_mode<synchronous>, transform_indices = @transform_1, window_bounds = array<i64: 128, 128>}, {pipeline_mode = #tpu.pipeline_mode<synchronous>, transform_indices = @transform_2, window_bounds = array<i64: 1, 128>}, {pipeline_mode = #tpu.pipeline_mode<synchronous>, transform_indices = @transform_3, window_bounds = array<i64: 128, 128>}, {pipeline_mode = #tpu.pipeline_mode<synchronous>, transform_indices = @transform_4, window_bounds = array<i64: 1, 128>}, {pipeline_mode = #tpu.pipeline_mode<synchronous>, transform_indices = @transform_5, window_bounds = array<i64: 128, 128>}, {pipeline_mode = #tpu.pipeline_mode<synchronous>, transform_indices = @transform_6, window_bounds = array<i64: 1, 128>}, {pipeline_mode = #tpu.pipeline_mode<synchronous>, transform_indices = @transform_7, window_bounds = array<i64: 128, 128>}, {pipeline_mode = #tpu.pipeline_mode<synchronous>, transform_indices = @transform_8, window_bounds = array<i64: 1, 128>}, {transform_indices = @transform_9, window_bounds = array<i64: 8, 128>}]} {
    %c0 = arith.constant 0 : index
    %c0_0 = arith.constant 0 : index
    %0 = vector.load %arg1[%c0, %c0_0] : memref<8x128xf32, #tpu.memory_space<vmem>>, vector<8x128xf32>
    %c0_1 = arith.constant 0 : index
    %c0_2 = arith.constant 0 : index
    %1 = vector.load %arg2[%c0_1, %c0_2] : memref<128x128xf32, #tpu.memory_space<vmem>>, vector<128x128xf32>
    %cst = arith.constant dense<0.000000e+00> : vector<8x128xf32>
    %2 = tpu.matmul %0, %1, %cst {dimension_numbers = #tpu.dot_dimension_numbers<[1], [0], [0], [1], [0, 0, 1, 1], [], []>, precision = #tpu.contract_precision<fp32>} : vector<8x128xf32>, vector<128x128xf32>, vector<8x128xf32> -> vector<8x128xf32>
    %c0_3 = arith.constant 0 : index
    %c0_4 = arith.constant 0 : index
    %3 = vector.load %arg3[%c0_3, %c0_4] : memref<1x128xf32, #tpu.memory_space<vmem>>, vector<1x128xf32>
    %4 = vector.broadcast %3 : vector<1x128xf32> to vector<8x128xf32>
    %5 = arith.addf %2, %4 : vector<8x128xf32>
    %c0_5 = arith.constant 0 : index
    %c0_6 = arith.constant 0 : index
    %6 = vector.load %arg4[%c0_5, %c0_6] : memref<128x128xf32, #tpu.memory_space<vmem>>, vector<128x128xf32>
    %cst_7 = arith.constant dense<0.000000e+00> : vector<8x128xf32>
    %7 = tpu.matmul %5, %6, %cst_7 {dimension_numbers = #tpu.dot_dimension_numbers<[1], [0], [0], [1], [0, 0, 1, 1], [], []>, precision = #tpu.contract_precision<fp32>} : vector<8x128xf32>, vector<128x128xf32>, vector<8x128xf32> -> vector<8x128xf32>
    %c0_8 = arith.constant 0 : index
    %c0_9 = arith.constant 0 : index
    %8 = vector.load %arg5[%c0_8, %c0_9] : memref<1x128xf32, #tpu.memory_space<vmem>>, vector<1x128xf32>
    %9 = vector.broadcast %8 : vector<1x128xf32> to vector<8x128xf32>
    %10 = arith.addf %7, %9 : vector<8x128xf32>
    %c0_10 = arith.constant 0 : index
    %c0_11 = arith.constant 0 : index
    %11 = vector.load %arg6[%c0_10, %c0_11] : memref<128x128xf32, #tpu.memory_space<vmem>>, vector<128x128xf32>
    %cst_12 = arith.constant dense<0.000000e+00> : vector<8x128xf32>
    %12 = tpu.matmul %10, %11, %cst_12 {dimension_numbers = #tpu.dot_dimension_numbers<[1], [0], [0], [1], [0, 0, 1, 1], [], []>, precision = #tpu.contract_precision<fp32>} : vector<8x128xf32>, vector<128x128xf32>, vector<8x128xf32> -> vector<8x128xf32>
    %c0_13 = arith.constant 0 : index
    %c0_14 = arith.constant 0 : index
    %13 = vector.load %arg7[%c0_13, %c0_14] : memref<1x128xf32, #tpu.memory_space<vmem>>, vector<1x128xf32>
    %14 = vector.broadcast %13 : vector<1x128xf32> to vector<8x128xf32>
    %15 = arith.addf %12, %14 : vector<8x128xf32>
    %c0_15 = arith.constant 0 : index
    %c0_16 = arith.constant 0 : index
    %16 = vector.load %arg8[%c0_15, %c0_16] : memref<128x128xf32, #tpu.memory_space<vmem>>, vector<128x128xf32>
    %cst_17 = arith.constant dense<0.000000e+00> : vector<8x128xf32>
    %17 = tpu.matmul %15, %16, %cst_17 {dimension_numbers = #tpu.dot_dimension_numbers<[1], [0], [0], [1], [0, 0, 1, 1], [], []>, precision = #tpu.contract_precision<fp32>} : vector<8x128xf32>, vector<128x128xf32>, vector<8x128xf32> -> vector<8x128xf32>
    %c0_18 = arith.constant 0 : index
    %c0_19 = arith.constant 0 : index
    %18 = vector.load %arg9[%c0_18, %c0_19] : memref<1x128xf32, #tpu.memory_space<vmem>>, vector<1x128xf32>
    %19 = vector.broadcast %18 : vector<1x128xf32> to vector<8x128xf32>
    %20 = arith.addf %17, %19 : vector<8x128xf32>
    %c0_20 = arith.constant 0 : index
    %c0_21 = arith.constant 0 : index
    %21 = vector.load %arg10[%c0_20, %c0_21] : memref<8x128xf32, #tpu.memory_space<vmem>>, vector<8x128xf32>
    tpu.vector_store %arg10[%c0_20, %c0_21], %20 {strides = array<i32>} : memref<8x128xf32, #tpu.memory_space<vmem>>, vector<8x128xf32>,
    return
  }
  func.func @transform_0(%arg0: i32) -> (i32, i32) {
    %c0_i32 = arith.constant 0 : i32
    %c0_i32_0 = arith.constant 0 : i32
    return %arg0, %c0_i32 : i32, i32
  }
  func.func @transform_1(%arg0: i32) -> (i32, i32) {
    %c0_i32 = arith.constant 0 : i32
    %c0_i32_0 = arith.constant 0 : i32
    %c0_i32_1 = arith.constant 0 : i32
    return %c0_i32, %c0_i32_0 : i32, i32
  }
  func.func @transform_2(%arg0: i32) -> (i32, i32) {
    %c0_i32 = arith.constant 0 : i32
    %c0_i32_0 = arith.constant 0 : i32
    %c0_i32_1 = arith.constant 0 : i32
    return %c0_i32, %c0_i32_0 : i32, i32
  }
  func.func @transform_3(%arg0: i32) -> (i32, i32) {
    %c0_i32 = arith.constant 0 : i32
    %c0_i32_0 = arith.constant 0 : i32
    %c0_i32_1 = arith.constant 0 : i32
    return %c0_i32, %c0_i32_0 : i32, i32
  }
  func.func @transform_4(%arg0: i32) -> (i32, i32) {
    %c0_i32 = arith.constant 0 : i32
    %c0_i32_0 = arith.constant 0 : i32
    %c0_i32_1 = arith.constant 0 : i32
    return %c0_i32, %c0_i32_0 : i32, i32
  }
  func.func @transform_5(%arg0: i32) -> (i32, i32) {
    %c0_i32 = arith.constant 0 : i32
    %c0_i32_0 = arith.constant 0 : i32
    %c0_i32_1 = arith.constant 0 : i32
    return %c0_i32, %c0_i32_0 : i32, i32
  }
  func.func @transform_6(%arg0: i32) -> (i32, i32) {
    %c0_i32 = arith.constant 0 : i32
    %c0_i32_0 = arith.constant 0 : i32
    %c0_i32_1 = arith.constant 0 : i32
    return %c0_i32, %c0_i32_0 : i32, i32
  }
  func.func @transform_7(%arg0: i32) -> (i32, i32) {
    %c0_i32 = arith.constant 0 : i32
    %c0_i32_0 = arith.constant 0 : i32
    %c0_i32_1 = arith.constant 0 : i32
    return %c0_i32, %c0_i32_0 : i32, i32
  }
  func.func @transform_8(%arg0: i32) -> (i32, i32) {
    %c0_i32 = arith.constant 0 : i32
    %c0_i32_0 = arith.constant 0 : i32
    %c0_i32_1 = arith.constant 0 : i32
    return %c0_i32, %c0_i32_0 : i32, i32
  }
  func.func @transform_9(%arg0: i32) -> (i32, i32) {
    %c0_i32 = arith.constant 0 : i32
    %c0_i32_0 = arith.constant 0 : i32
    return %arg0, %c0_i32 : i32, i32
  }
}

</mosaic_0001>

<bundles_post_ra>
// kernel: tpu_custom_call.1
= control target key start
LH: loop header
LB: loop body
LE: loop exit
PB: predicated region body
PF: predicated region fallthrough
CT: control target
= control target key end

     0   :  { %14 = vsyncpa [#allocation3], 0  ;;  %s2774_s0 = inlined_call_operand.hbm [shape: f32[8,128], index: 0, kind: input, shape index: {}]   ;;  %s2775_s1 = inlined_call_operand.hbm [shape: f32[128,128], index: 1, kind: input, shape index: {}]   ;;  %s2776_s2 = inlined_call_operand.vmem [shape: f32[1,128], index: 2, kind: input, shape index: {}]   ;;  %s2777_s3 = inlined_call_operand.hbm [shape: f32[128,128], index: 3, kind: input, shape index: {}]   ;;  %s2778_s4 = inlined_call_operand.vmem [shape: f32[1,128], index: 4, kind: input, shape index: {}]   ;;  %s2779_s5 = inlined_call_operand.hbm [shape: f32[128,128], index: 5, kind: input, shape index: {}]   ;;  %s2780_s6 = inlined_call_operand.vmem [shape: f32[1,128], index: 6, kind: input, shape index: {}]   ;;  %s2781_s7 = inlined_call_operand.hbm [shape: f32[128,128], index: 7, kind: input, shape index: {}]   ;;  %s2782_s8 = inlined_call_operand.vmem [shape: f32[1,128], index: 8, kind: input, shape index: {}]   ;;  %s2783_s9 = inlined_call_operand.hbm [shape: f32[8,128], index: 9, kind: output, shape index: {}]  }
   0x1   :  { %15 = vsyncpa [#allocation6], 0 }
   0x2   :  { %16 = vsyncpa [#allocation9], 0  ;;  %s33_s11 = sshll.u32 %s2775_s1, 4  ;;  %s34_s11 = int_to_ptr.hbm [resolvable:$true] %s33_s11 }
   0x3   :  { %17 = vsyncpa [#allocation4], 0  ;;  %s1738_s12 = smov [#allocation5]   ;;  %s63_s16 = sshll.u32 %s2779_s5, 4  ;;  %s64_s16 = int_to_ptr.hbm [resolvable:$true] %s63_s16 }
   0x4   :  { %s35_s13 = sshll.u32 %s1738_s12, 4  ;;  %s1739_s17 = smov 128   ;;  %s36_s13 = int_to_ptr.vmem [resolvable:$true] %s35_s13 }
   0x5   :  { %s1740_s18 = smov 8   ;;  %s1741_s19 = smov [#allocation8]  }
   0x6   :  { %41 = dma.hbm_to_vmem [thread:$0]  %s34_s11, 2048, %s36_s13, [#allocation6], %s1739_s17, %s1739_s17, %s1740_s18  }
   0x7   :  { %s65_s20 = sshll.u32 %s1741_s19, 4  ;;  %s23_s23 = sshll.u32 %s2774_s0, 4  ;;  %s66_s20 = int_to_ptr.vmem [resolvable:$true] %s65_s20  ;;  %s24_s23 = int_to_ptr.hbm [resolvable:$true] %s23_s23 }
   0x8   :  { %71 = dma.hbm_to_vmem [thread:$0]  %s64_s16, 2048, %s66_s20, [#allocation9], %s1739_s17, %s1739_s17, %s1740_s18  }
   0x9   :  { %s48_s25 = sshll.u32 %s2777_s3, 4  ;;  %s1742_s26 = smov [#allocation2]   ;;  %s49_s25 = int_to_ptr.hbm [resolvable:$true] %s48_s25 }
   0xa   :  { %s25_s27 = sshll.u32 %s1742_s26, 4  ;;  %s1743_s5 = smov [#allocation7]   ;;  %s26_s27 = int_to_ptr.vmem [resolvable:$true] %s25_s27 }
   0xb   :  { %28 = dma.hbm_to_vmem [thread:$0]  %s24_s23, 128, %s26_s27, [#allocation3]  }
   0xc   :  { %s50_s28 = sshll.u32 %s1743_s5, 4  ;;  %s78_s10 = sshll.u32 %s2781_s7, 4  ;;  %s51_s28 = int_to_ptr.vmem [resolvable:$true] %s50_s28  ;;  %s79_s10 = int_to_ptr.hbm [resolvable:$true] %s78_s10 }
   0xd   :  { %56 = dma.hbm_to_vmem [thread:$0]  %s49_s25, 2048, %s51_s28, [#allocation6], %s1739_s17, %s1739_s17, %s1740_s18  }
   0xe   :  { %s1744_s0 = smov [#allocation10]  }
   0xf   :  { %s80_s11 = sshll.u32 %s1744_s0, 4  ;;  %s81_s11 = int_to_ptr.vmem [resolvable:$true] %s80_s11 }
  0x10   :  { %86 = dma.hbm_to_vmem [thread:$0]  %s79_s10, 2048, %s81_s11, [#allocation9], %s1739_s17, %s1739_s17, %s1740_s18  }
  0x11   :  { %1730 = dma.done.wait [#allocation3], 128  }
  0x12   :  { %1731 = vsyncadd [#allocation3], 4294967168 }
  0x13   :  { %1732 = dma.done.wait [#allocation6], 4096  }
  0x14   :  { %1733 = vsyncadd [#allocation6], 4294963200 }
  0x15   :  { %1734 = dma.done.wait [#allocation9], 4096  }
  0x16   :  { %1735 = vsyncadd [#allocation9], 4294963200  ;;  %v125_v0 = vld [vmem:[#allocation5 + $0x78] sm:$0xff]  ;;  %v124_v1 = vld [vmem:[#allocation5 + $0x70] sm:$0xff]  ;;  %s1745_s15 = smov [#allocation11]   ;;  %s1562_s19 = sshll.u32 %s2783_s9, 4  ;;  %s1563_s19 = int_to_ptr.hbm [resolvable:$true] %s1562_s19 }
  0x17   :  { %v123_v2 = vld [vmem:[#allocation5 + $0x68] sm:$0xff]  ;;  %v1811_v3 = vand.u32 4294901760, %v125_v0  ;;  %v1813_v4 = vand.u32 4294901760, %v124_v1  ;;  %v122_v6 = vld [vmem:[#allocation5 + $0x60] sm:$0xff]  ;;  %v121_v7 = vld [vmem:[#allocation5 + $0x58] sm:$0xff]  ;;  %s1560_s16 = sshll.u32 %s1745_s15, 4  ;;  %s1561_s16 = int_to_ptr.vmem [resolvable:$true] %s1560_s16 }
  0x18   :  { %v1815_v5 = vand.u32 4294901760, %v123_v2  ;;  %v120_v8 = vld [vmem:[#allocation5 + $0x50] sm:$0xff]  ;;  %v1817_v9 = vand.u32 4294901760, %v122_v6  ;;  %v1819_v10 = vand.u32 4294901760, %v121_v7  ;;  %v119_v12 = vld [vmem:[#allocation5 + $0x48] sm:$0xff]  ;;  %v118_v13 = vld [vmem:[#allocation5 + $0x40] sm:$0xff] }
  0x19   :  { %v1821_v11 = vand.u32 4294901760, %v120_v8  ;;  %131 = vmatpush.msra.mxu0 %v1811_v3  ;;  %v1825_v14 = vsub.f32 %v125_v0, %v1811_v3  ;;  %v1828_v15 = vsub.f32 %v124_v1, %v1813_v4  ;;  %v1833_v17 = vand.u32 4294901760, %v119_v12  ;;  %327 = vmatpush.msra.mxu3 %v1811_v3  ;;  %v117_v21 = vld [vmem:[#allocation5 + $0x38] sm:$0xff]  ;;  %v116_v34 = vld [vmem:[#allocation5 + $0x30] sm:$0xff]  ;;  %v115_v35 = vld [vmem:[#allocation5 + $0x28] sm:$0xff] }
  0x1a   :  { %v1831_v16 = vsub.f32 %v123_v2, %v1815_v5  ;;  %v1837_v18 = vsub.f32 %v122_v6, %v1817_v9  ;;  %v1840_v19 = vsub.f32 %v121_v7, %v1819_v10  ;;  %v1842_v20 = vand.u32 4294901760, %v118_v13  ;;  %v114_v42 = vld [vmem:[#allocation5 + $0x20] sm:$0xff]  ;;  %v113_v47 = vld [vmem:[#allocation5 + $0x18] sm:$0xff]  ;;  %v112_v53 = vld [vmem:[#allocation5 + $0x10] sm:$0xff] }
  0x1b   :  { %133 = vmatpush.msra.mxu0 %v1813_v4  ;;  %v173_v22 = vand.u32 4294901760, %v1825_v14  ;;  %v179_v23 = vand.u32 4294901760, %v1828_v15  ;;  %v1849_v25 = vsub.f32 %v120_v8, %v1821_v11  ;;  %274 = vmatpush.msra.mxu2 %v1825_v14  ;;  %v1855_v28 = vsub.f32 %v119_v12, %v1833_v17  ;;  %v111_v61 = vld [vmem:[#allocation5 + $0x8] sm:$0xff]  ;;  %v110_v2 = vld [vmem:[#allocation5] sm:$0xff] }
  0x1c   :  { %v185_v24 = vand.u32 4294901760, %v1831_v16  ;;  %v191_v26 = vand.u32 4294901760, %v1837_v18  ;;  %v197_v27 = vand.u32 4294901760, %v1840_v19  ;;  %329 = vmatpush.msra.mxu3 %v1813_v4  ;;  %v1868_v32 = vand.u32 4294901760, %v117_v21 }
  0x1d   :  { %v174_v29 = vsub.f32 %v1825_v14, %v173_v22  ;;  %135 = vmatpush.msra.mxu0 %v1815_v5  ;;  %v180_v30 = vsub.f32 %v1828_v15, %v179_v23  ;;  %277 = vmatpush.msra.mxu2 %v1828_v15  ;;  %v1872_v33 = vsub.f32 %v118_v13, %v1842_v20  ;;  %v203_v39 = vand.u32 4294901760, %v1849_v25  ;;  %v486_v14 = vld [vmem:[#allocation7 + $0x78] sm:$0xff] }
  0x1e   :  { %v186_v31 = vsub.f32 %v1831_v16, %v185_v24  ;;  %331 = vmatpush.msra.mxu3 %v1815_v5  ;;  %v192_v38 = vsub.f32 %v1837_v18, %v191_v26  ;;  %v198_v40 = vsub.f32 %v1840_v19, %v197_v27  ;;  %v209_v41 = vand.u32 4294901760, %v1855_v28 }
  0x1f   :  { %v175_v36 = vand.u32 4294901760, %v174_v29  ;;  %v181_v37 = vand.u32 4294901760, %v180_v30  ;;  %137 = vmatpush.msra.mxu0 %v1817_v9  ;;  %280 = vmatpush.msra.mxu2 %v1831_v16  ;;  %v1887_v44 = vand.u32 4294901760, %v116_v34  ;;  %v1890_v45 = vsub.f32 %v117_v21, %v1868_v32  ;;  %v109_v29 = vld [vmem:[#allocation2] sm:$0xff] }
  0x20   :  { %333 = vmatpush.msra.mxu3 %v1817_v9  ;;  %v187_v43 = vand.u32 4294901760, %v186_v31  ;;  %v1892_v46 = vand.u32 4294901760, %v115_v35  ;;  %v215_v48 = vand.u32 4294901760, %v1872_v33  ;;  %v193_v49 = vand.u32 4294901760, %v192_v38 }
  0x21   :  { %176 = vmatpush.msra.mxu1 %v175_v36  ;;  %139 = vmatpush.msra.mxu0 %v1819_v10  ;;  %v204_v50 = vsub.f32 %v1849_v25, %v203_v39  ;;  %v1902_v51 = vsub.f32 %v116_v34, %v1887_v44  ;;  %v1904_v52 = vand.u32 4294901760, %v114_v42  ;;  %v1906_v54 = vand.u32 4294901760, %v113_v47 }
  0x22   :  { %283 = vmatpush.msra.mxu2 %v1837_v18  ;;  %335 = vmatpush.msra.mxu3 %v1819_v10  ;;  %v199_v55 = vand.u32 4294901760, %v198_v40  ;;  %v210_v56 = vsub.f32 %v1855_v28, %v209_v41  ;;  %v221_v57 = vand.u32 4294901760, %v1890_v45  ;;  %v1916_v58 = vsub.f32 %v115_v35, %v1892_v46 }
  0x23   :  { %182 = vmatpush.msra.mxu1 %v181_v37  ;;  %141 = vmatpush.msra.mxu0 %v1821_v11  ;;  %v216_v59 = vsub.f32 %v1872_v33, %v215_v48  ;;  %v1921_v60 = vand.u32 4294901760, %v112_v53  ;;  %v205_v62 = vand.u32 4294901760, %v204_v50  ;;  %v227_v63 = vand.u32 4294901760, %v1902_v51 }
  0x24   :  { %286 = vmatpush.msra.mxu2 %v1840_v19  ;;  %337 = vmatpush.msra.mxu3 %v1821_v11  ;;  %v1928_v0 = vsub.f32 %v114_v42, %v1904_v52  ;;  %v1931_v1 = vsub.f32 %v113_v47, %v1906_v54  ;;  %v211_v6 = vand.u32 4294901760, %v210_v56  ;;  %v222_v7 = vsub.f32 %v1890_v45, %v221_v57  ;;  %v479_v19 = vld [vmem:[#allocation7 + $0x40] sm:$0xff] }
  0x25   :  { %188 = vmatpush.msra.mxu1 %v187_v43  ;;  %143 = vmatpush.msra.mxu0 %v1833_v17  ;;  %v233_v8 = vand.u32 4294901760, %v1916_v58  ;;  %v1940_v12 = vand.u32 4294901760, %v111_v61  ;;  %v217_v13 = vand.u32 4294901760, %v216_v59  ;;  %v1943_v21 = vsub.f32 %v112_v53, %v1921_v60 }
  0x26   :  { %289 = vmatpush.msra.mxu2 %v1849_v25  ;;  %339 = vmatpush.msra.mxu3 %v1833_v17  ;;  %v228_v30 = vsub.f32 %v1902_v51, %v227_v63  ;;  %v239_v31 = vand.u32 4294901760, %v1928_v0  ;;  %v1952_v34 = vand.u32 4294901760, %v110_v2  ;;  %v1954_v35 = vand.u32 4294901760, %v109_v29 }
  0x27   :  { %194 = vmatpush.msra.mxu1 %v193_v49  ;;  %145 = vmatpush.msra.mxu0 %v1842_v20  ;;  %v245_v36 = vand.u32 4294901760, %v1931_v1  ;;  %v223_v37 = vand.u32 4294901760, %v222_v7  ;;  %v234_v38 = vsub.f32 %v1916_v58, %v233_v8  ;;  %v1964_v40 = vsub.f32 %v111_v61, %v1940_v12 }
  0x28   :  { %292 = vmatpush.msra.mxu2 %v1855_v28  ;;  %341 = vmatpush.msra.mxu3 %v1842_v20  ;;  %v163_v42 = vsub.f32 %v109_v29, %v1954_v35  ;;  %v229_v43 = vand.u32 4294901760, %v228_v30  ;;  %v240_v47 = vsub.f32 %v1928_v0, %v239_v31  ;;  %v251_v49 = vand.u32 4294901760, %v1943_v21 }
  0x29   :  { %200 = vmatpush.msra.mxu1 %v199_v55  ;;  %147 = vmatpush.msra.mxu0 %v1868_v32  ;;  %v1975_v50 = vsub.f32 %v110_v2, %v1952_v34  ;;  %v235_v53 = vand.u32 4294901760, %v234_v38  ;;  %v246_v55 = vsub.f32 %v1931_v1, %v245_v36  ;;  %v257_v56 = vand.u32 4294901760, %v1964_v40 }
  0x2a   :  { %295 = vmatpush.msra.mxu2 %v1872_v33  ;;  %343 = vmatpush.msra.mxu3 %v1868_v32  ;;  %v164_v59 = vand.u32 4294901760, %v163_v42  ;;  %v241_v61 = vand.u32 4294901760, %v240_v47  ;;  %v484_v47 = vld [vmem:[#allocation7 + $0x68] sm:$0xff]  ;;  %v2017_v15 = vand.u32 4294901760, %v486_v14  ;;  %v478_v33 = vld [vmem:[#allocation7 + $0x38] sm:$0xff] }
  0x2b   :  { %206 = vmatpush.msra.mxu1 %v205_v62  ;;  %149 = vmatpush.msra.mxu0 %v1887_v44  ;;  %v252_v62 = vsub.f32 %v1943_v21, %v251_v49  ;;  %v263_v2 = vand.u32 4294901760, %v1975_v50  ;;  %v258_v7 = vsub.f32 %v1964_v40, %v257_v56  ;;  %v2021_v16 = vand.u32 4294901760, %v484_v47 }
  0x2c   :  { %298 = vmatpush.msra.mxu2 %v1890_v45  ;;  %345 = vmatpush.msra.mxu3 %v1887_v44  ;;  %v2096_v45 = vand.u32 4294901760, %v478_v33 }
  0x2d   :  { %212 = vmatpush.msra.mxu1 %v211_v6  ;;  %151 = vmatpush.msra.mxu0 %v1892_v46  ;;  %v247_v6 = vand.u32 4294901760, %v246_v55  ;;  %v253_v29 = vand.u32 4294901760, %v252_v62  ;;  %v264_v30 = vsub.f32 %v1975_v50, %v263_v2 }
  0x2e   :  { %301 = vmatpush.msra.mxu2 %v1902_v51  ;;  %347 = vmatpush.msra.mxu3 %v1892_v46  ;;  %v2111_v51 = vsub.f32 %v478_v33, %v2096_v45 }
  0x2f   :  { %218 = vmatpush.msra.mxu1 %v217_v13  ;;  %153 = vmatpush.msra.mxu0 %v1904_v52  ;;  %v165_v13 = vsub.f32 %v163_v42, %v164_v59 }
  0x30   :  { %304 = vmatpush.msra.mxu2 %v1916_v58  ;;  %349 = vmatpush.msra.mxu3 %v1904_v52 }
  0x31   :  { %224 = vmatpush.msra.mxu1 %v223_v37  ;;  %155 = vmatpush.msra.mxu0 %v1906_v54  ;;  %v259_v37 = vand.u32 4294901760, %v258_v7  ;;  %v166_v38 = vand.u32 4294901760, %v165_v13  ;;  %v2057_v13 = vand.u32 4294901760, %v479_v19 }
  0x32   :  { %307 = vmatpush.msra.mxu2 %v1928_v0  ;;  %351 = vmatpush.msra.mxu3 %v1906_v54  ;;  %v472_v0 = vld [vmem:[#allocation7 + $0x8] sm:$0xff] }
  0x33   :  { %230 = vmatpush.msra.mxu1 %v229_v43  ;;  %157 = vmatpush.msra.mxu0 %v1921_v60  ;;  %v265_v43 = vand.u32 4294901760, %v264_v30 }
  0x34   :  { %310 = vmatpush.msra.mxu2 %v1931_v1  ;;  %353 = vmatpush.msra.mxu3 %v1921_v60  ;;  %v471_v1 = vld [vmem:[#allocation7] sm:$0xff] }
  0x35   :  { %236 = vmatpush.msra.mxu1 %v235_v53  ;;  %159 = vmatpush.msra.mxu0 %v1940_v12  ;;  %v481_v53 = vld [vmem:[#allocation7 + $0x50] sm:$0xff] }
  0x36   :  { %313 = vmatpush.msra.mxu2 %v1943_v21  ;;  %355 = vmatpush.msra.mxu3 %v1940_v12  ;;  %v2028_v55 = vand.u32 4294901760, %v481_v53 }
  0x37   :  { %242 = vmatpush.msra.mxu1 %v241_v61  ;;  %161 = vmatpush.msra.mxu0 %v1952_v34  ;;  %v2040_v61 = vsub.f32 %v484_v47, %v2021_v16 }
  0x38   :  { %316 = vmatpush.msra.mxu2 %v1964_v40  ;;  %357 = vmatpush.msra.mxu3 %v1952_v34  ;;  %v2062_v30 = vsub.f32 %v481_v53, %v2028_v55 }
  0x39   :  { %368 = vmatpush.msrb.mxu0 %v173_v22  ;;  %248 = vmatpush.msra.mxu1 %v247_v6  ;;  %v485_v22 = vld [vmem:[#allocation7 + $0x70] sm:$0xff]  ;;  %v546_v7 = vand.u32 4294901760, %v2040_v61 }
  0x3a   :  { %319 = vmatpush.msra.mxu2 %v1975_v50  ;;  %361 = vmatmul.f32.vlgmr.msra.gmra.mxu3 %v164_v59 }
  0x3b   :  { %372 = vmatpush.msrb.mxu0 %v179_v23  ;;  %254 = vmatpush.msra.mxu1 %v253_v29  ;;  %v2019_v23 = vand.u32 4294901760, %v485_v22 }
  0x3c   :  { %322 = vmatmul.f32.vlgmr.msra.gmra.mxu2 %v163_v42  ;;  %167 = vmatmul.f32.vlgmr.msra.gmra.mxu0 %v166_v38  ;;  %v482_v42 = vld [vmem:[#allocation7 + $0x58] sm:$0xff] }
  0x3d   :  { %376 = vmatpush.msrb.mxu0 %v185_v24  ;;  %260 = vmatpush.msra.mxu1 %v259_v37  ;;  %v483_v24 = vld [vmem:[#allocation7 + $0x60] sm:$0xff]  ;;  %v2037_v59 = vsub.f32 %v485_v22, %v2019_v23  ;;  %v547_v37 = vsub.f32 %v2040_v61, %v546_v7 }
  0x3e   :  { %v2024_v18 = vand.u32 4294901760, %v483_v24  ;;  %492 = vmatpush.msrb.mxu2 %v2017_v15 }
  0x3f   :  { %380 = vmatpush.msrb.mxu0 %v191_v26  ;;  %266 = vmatpush.msra.mxu1 %v265_v43  ;;  %v2026_v26 = vand.u32 4294901760, %v482_v42  ;;  %v2085_v43 = vsub.f32 %v479_v19, %v2057_v13  ;;  %v548_v53 = vand.u32 4294901760, %v547_v37 }
  0x40   :  { %268 = vmatmul.f32.vlgmr.msra.gmra.mxu1 %v1954_v35  ;;  %v2045_v6 = vsub.f32 %v483_v24, %v2024_v18  ;;  %494 = vmatpush.msrb.mxu2 %v2019_v23  ;;  %v564_v24 = vand.u32 4294901760, %v2062_v30 }
  0x41   :  { %435 = vmatpush.msrb.mxu1 %v1811_v3  ;;  %384 = vmatpush.msrb.mxu0 %v197_v27  ;;  %v480_v3 = vld [vmem:[#allocation7 + $0x48] sm:$0xff]  ;;  %v2034_v27 = vsub.f32 %v486_v14, %v2017_v15 }
  0x42   :  { %v2042_v62 = vand.u32 4294901760, %v480_v3  ;;  %v552_v29 = vand.u32 4294901760, %v2045_v6  ;;  %496 = vmatpush.msrb.mxu2 %v2021_v16  ;;  %v476_v14 = vld [vmem:[#allocation7 + $0x28] sm:$0xff] }
  0x43   :  { %437 = vmatpush.msrb.mxu1 %v1813_v4  ;;  %388 = vmatpush.msrb.mxu0 %v203_v39  ;;  %v2049_v4 = vsub.f32 %v482_v42, %v2026_v26  ;;  %v534_v25 = vand.u32 4294901760, %v2034_v27  ;;  %v540_v39 = vand.u32 4294901760, %v2037_v59  ;;  %v475_v42 = vld [vmem:[#allocation7 + $0x20] sm:$0xff]  ;;  %v2104_v19 = vand.u32 4294901760, %v476_v14 }
  0x44   :  { %v553_v47 = vsub.f32 %v2045_v6, %v552_v29  ;;  %498 = vmatpush.msrb.mxu2 %v2024_v18 }
  0x45   :  { %439 = vmatpush.msrb.mxu1 %v1815_v5  ;;  %392 = vmatpush.msrb.mxu0 %v209_v41  ;;  %v535_v5 = vsub.f32 %v2034_v27, %v534_v25  ;;  %v541_v28 = vsub.f32 %v2037_v59, %v540_v39  ;;  %v2074_v41 = vsub.f32 %v480_v3, %v2042_v62 }
  0x46   :  { %500 = vmatpush.msrb.mxu2 %v2026_v26 }
  0x47   :  { %441 = vmatpush.msrb.mxu1 %v1817_v9  ;;  %396 = vmatpush.msrb.mxu0 %v215_v48  ;;  %v558_v9 = vand.u32 4294901760, %v2049_v4  ;;  %v477_v48 = vld [vmem:[#allocation7 + $0x30] sm:$0xff]  ;;  %v536_v38 = vand.u32 4294901760, %v535_v5  ;;  %v542_v22 = vand.u32 4294901760, %v541_v28  ;;  %v554_v5 = vand.u32 4294901760, %v553_v47 }
  0x48   :  { %v565_v28 = vsub.f32 %v2062_v30, %v564_v24  ;;  %502 = vmatpush.msrb.mxu2 %v2028_v55 }
  0x49   :  { %443 = vmatpush.msrb.mxu1 %v1819_v10  ;;  %400 = vmatpush.msrb.mxu0 %v221_v57  ;;  %v570_v10 = vand.u32 4294901760, %v2074_v41  ;;  %v2098_v57 = vand.u32 4294901760, %v477_v48  ;;  %v559_v3 = vsub.f32 %v2049_v4, %v558_v9 }
  0x4a   :  { %537 = vmatpush.msrb.mxu3 %v536_v38  ;;  %v582_v38 = vand.u32 4294901760, %v2111_v51  ;;  %504 = vmatpush.msrb.mxu2 %v2042_v62 }
  0x4b   :  { %445 = vmatpush.msrb.mxu1 %v1821_v11  ;;  %404 = vmatpush.msrb.mxu0 %v227_v63  ;;  %v576_v11 = vand.u32 4294901760, %v2085_v43  ;;  %v474_v63 = vld [vmem:[#allocation7 + $0x18] sm:$0xff]  ;;  %v2118_v37 = vsub.f32 %v477_v48, %v2098_v57  ;;  %v571_v58 = vsub.f32 %v2074_v41, %v570_v10  ;;  %v560_v33 = vand.u32 4294901760, %v559_v3 }
  0x4c   :  { %543 = vmatpush.msrb.mxu3 %v542_v22  ;;  %v2131_v48 = vsub.f32 %v476_v14, %v2104_v19  ;;  %v2133_v22 = vand.u32 4294901760, %v474_v63  ;;  %506 = vmatpush.msrb.mxu2 %v2057_v13 }
  0x4d   :  { %447 = vmatpush.msrb.mxu1 %v1833_v17  ;;  %408 = vmatpush.msrb.mxu0 %v233_v8  ;;  %v2120_v17 = vand.u32 4294901760, %v475_v42  ;;  %v473_v8 = vld [vmem:[#allocation7 + $0x10] sm:$0xff]  ;;  %v588_v47 = vand.u32 4294901760, %v2118_v37 }
  0x4e   :  { %549 = vmatpush.msrb.mxu3 %v548_v53  ;;  %v2146_v53 = vand.u32 4294901760, %v473_v8  ;;  %v594_v3 = vand.u32 4294901760, %v2131_v48  ;;  %508 = vmatpush.msrb.mxu2 %v2096_v45 }
  0x4f   :  { %449 = vmatpush.msrb.mxu1 %v1842_v20  ;;  %412 = vmatpush.msrb.mxu0 %v239_v31  ;;  %v577_v20 = vsub.f32 %v2085_v43, %v576_v11  ;;  %v566_v31 = vand.u32 4294901760, %v565_v28  ;;  %v2144_v14 = vsub.f32 %v475_v42, %v2120_v17  ;;  %v2157_v42 = vsub.f32 %v474_v63, %v2133_v22 }
  0x50   :  { %555 = vmatpush.msrb.mxu3 %v554_v5  ;;  %v2159_v5 = vand.u32 4294901760, %v472_v0  ;;  %v589_v21 = vsub.f32 %v2118_v37, %v588_v47  ;;  %510 = vmatpush.msrb.mxu2 %v2098_v57  ;;  %v2170_v63 = vsub.f32 %v473_v8, %v2146_v53  ;;  %v2172_v28 = vand.u32 4294901760, %v471_v1 }
  0x51   :  { %451 = vmatpush.msrb.mxu1 %v1868_v32  ;;  %416 = vmatpush.msrb.mxu0 %v245_v36  ;;  %v572_v32 = vand.u32 4294901760, %v571_v58  ;;  %v583_v36 = vsub.f32 %v2111_v51, %v582_v38  ;;  %v595_v40 = vsub.f32 %v2131_v48, %v594_v3 }
  0x52   :  { %561 = vmatpush.msrb.mxu3 %v560_v33  ;;  %v2183_v58 = vsub.f32 %v472_v0, %v2159_v5  ;;  %512 = vmatpush.msrb.mxu2 %v2104_v19  ;;  %v2193_v8 = vsub.f32 %v471_v1, %v2172_v28 }
  0x53   :  { %453 = vmatpush.msrb.mxu1 %v1887_v44  ;;  %420 = vmatpush.msrb.mxu0 %v251_v49  ;;  %v578_v44 = vand.u32 4294901760, %v577_v20  ;;  %v600_v49 = vand.u32 4294901760, %v2144_v14 }
  0x54   :  { %567 = vmatpush.msrb.mxu3 %v566_v31  ;;  %v618_v20 = vand.u32 4294901760, %v2183_v58  ;;  %514 = vmatpush.msrb.mxu2 %v2120_v17  ;;  %v624_v31 = vand.u32 4294901760, %v2193_v8 }
  0x55   :  { %455 = vmatpush.msrb.mxu1 %v1892_v46  ;;  %424 = vmatpush.msrb.mxu0 %v257_v56  ;;  %v584_v46 = vand.u32 4294901760, %v583_v36  ;;  %v606_v56 = vand.u32 4294901760, %v2157_v42  ;;  %v601_v50 = vsub.f32 %v2144_v14, %v600_v49 }
  0x56   :  { %573 = vmatpush.msrb.mxu3 %v572_v32  ;;  %516 = vmatpush.msrb.mxu2 %v2133_v22  ;;  %v619_v32 = vsub.f32 %v2183_v58, %v618_v20 }
  0x57   :  { %457 = vmatpush.msrb.mxu1 %v1904_v52  ;;  %428 = vmatpush.msrb.mxu0 %v263_v2  ;;  %v590_v52 = vand.u32 4294901760, %v589_v21  ;;  %v612_v2 = vand.u32 4294901760, %v2170_v63  ;;  %v607_v33 = vsub.f32 %v2157_v42, %v606_v56  ;;  %v602_v0 = vand.u32 4294901760, %v601_v50 }
  0x58   :  { %430 = vmatmul.f32.vlgmr.msrb.gmra.mxu0 %v1954_v35  ;;  %579 = vmatpush.msrb.mxu3 %v578_v44 }
  0x59   :  { %459 = vmatpush.msrb.mxu1 %v1906_v54  ;;  %635 = vmatpush.msra.mxu0 %v2034_v27  ;;  %v596_v54 = vand.u32 4294901760, %v595_v40  ;;  %v838_v40 = vld [vmem:[#allocation8 + $0x30] sm:$0xff] }
  0x5a   :  { %585 = vmatpush.msrb.mxu3 %v584_v46  ;;  %518 = vmatpush.msrb.mxu2 %v2146_v53  ;;  %v839_v46 = vld [vmem:[#allocation8 + $0x38] sm:$0xff] }
  0x5b   :  { %461 = vmatpush.msrb.mxu1 %v1921_v60  ;;  %638 = vmatpush.msra.mxu0 %v2037_v59  ;;  %v613_v60 = vsub.f32 %v2170_v63, %v612_v2  ;;  %v847_v59 = vld [vmem:[#allocation8 + $0x78] sm:$0xff] }
  0x5c   :  { %591 = vmatpush.msrb.mxu3 %v590_v52  ;;  %520 = vmatpush.msrb.mxu2 %v2159_v5 }
  0x5d   :  { %463 = vmatpush.msrb.mxu1 %v1940_v12  ;;  %641 = vmatpush.msra.mxu0 %v2040_v61  ;;  %v608_v12 = vand.u32 4294901760, %v607_v33  ;;  %v614_v1 = vand.u32 4294901760, %v613_v60  ;;  %v846_v61 = vld [vmem:[#allocation8 + $0x70] sm:$0xff]  ;;  %v2369_v60 = vand.u32 4294901760, %v838_v40 }
  0x5e   :  { %597 = vmatpush.msrb.mxu3 %v596_v54  ;;  %522 = vmatpush.msrb.mxu2 %v2172_v28  ;;  %v836_v54 = vld [vmem:[#allocation8 + $0x20] sm:$0xff] }
  0x5f   :  { %465 = vmatpush.msrb.mxu1 %v1952_v34  ;;  %644 = vmatpush.msra.mxu0 %v2045_v6  ;;  %v625_v34 = vsub.f32 %v2193_v8, %v624_v31 }
  0x60   :  { %467 = vmatmul.f32.vlgmr.msrb.gmra.mxu1 %v1954_v35  ;;  %603 = vmatpush.msrb.mxu3 %v602_v0  ;;  %v620_v35 = vand.u32 4294901760, %v619_v32  ;;  %v2367_v0 = vand.u32 4294901760, %v839_v46 }
  0x61   :  { %688 = vmatpush.msra.mxu1 %v2017_v15  ;;  %647 = vmatpush.msra.mxu0 %v2049_v4  ;;  %v626_v36 = vand.u32 4294901760, %v625_v34  ;;  %v2300_v4 = vand.u32 4294901760, %v847_v59  ;;  %v835_v34 = vld [vmem:[#allocation8 + $0x18] sm:$0xff] }
  0x62   :  { %609 = vmatpush.msrb.mxu3 %v608_v12  ;;  %729 = vmatpush.msra.mxu2 %v534_v25  ;;  %v2302_v25 = vand.u32 4294901760, %v846_v61 }
  0x63   :  { %690 = vmatpush.msra.mxu1 %v2019_v23  ;;  %650 = vmatpush.msra.mxu0 %v2062_v30 }
  0x64   :  { %615 = vmatpush.msrb.mxu3 %v614_v1  ;;  %733 = vmatpush.msra.mxu2 %v540_v39 }
  0x65   :  { %692 = vmatpush.msra.mxu1 %v2021_v16  ;;  %653 = vmatpush.msra.mxu0 %v2074_v41 }
  0x66   :  { %621 = vmatpush.msrb.mxu3 %v620_v35  ;;  %737 = vmatpush.msra.mxu2 %v546_v7  ;;  %v844_v7 = vld [vmem:[#allocation8 + $0x60] sm:$0xff] }
  0x67   :  { %694 = vmatpush.msra.mxu1 %v2024_v18  ;;  %656 = vmatpush.msra.mxu0 %v2085_v43  ;;  %v2306_v30 = vand.u32 4294901760, %v844_v7  ;;  %v841_v43 = vld [vmem:[#allocation8 + $0x48] sm:$0xff] }
  0x68   :  { %627 = vmatpush.msrb.mxu3 %v626_v36  ;;  %741 = vmatpush.msra.mxu2 %v552_v29  ;;  %v842_v29 = vld [vmem:[#allocation8 + $0x50] sm:$0xff]  ;;  %v2378_v36 = vsub.f32 %v839_v46, %v2367_v0 }
  0x69   :  { %696 = vmatpush.msra.mxu1 %v2026_v26  ;;  %659 = vmatpush.msra.mxu0 %v2111_v51  ;;  %v2325_v51 = vsub.f32 %v844_v7, %v2306_v30 }
  0x6a   :  { %796 = vmatpush.msra.mxu3 %v2017_v15  ;;  %745 = vmatpush.msra.mxu2 %v558_v9  ;;  %v1582_v15 = vld [vmem:[%s2776_s2] ss:$0 sm:$0xff]  ;;  %v2310_v9 = vand.u32 4294901760, %v842_v29 }
  0x6b   :  { %698 = vmatpush.msra.mxu1 %v2028_v55  ;;  %662 = vmatpush.msra.mxu0 %v2118_v37 }
  0x6c   :  { %798 = vmatpush.msra.mxu3 %v2019_v23  ;;  %749 = vmatpush.msra.mxu2 %v564_v24  ;;  %v2313_v24 = vsub.f32 %v847_v59, %v2300_v4 }
  0x6d   :  { %700 = vmatpush.msra.mxu1 %v2042_v62  ;;  %665 = vmatpush.msra.mxu0 %v2131_v48 }
  0x6e   :  { %800 = vmatpush.msra.mxu3 %v2021_v16  ;;  %753 = vmatpush.msra.mxu2 %v570_v10  ;;  %v2316_v10 = vsub.f32 %v846_v61, %v2302_v25  ;;  %v895_v48 = vand.u32 4294901760, %v2313_v24  ;;  %v2396_v61 = vand.u32 4294901760, %v835_v34 }
  0x6f   :  { %702 = vmatpush.msra.mxu1 %v2057_v13  ;;  %668 = vmatpush.msra.mxu0 %v2144_v14  ;;  %v913_v14 = vand.u32 4294901760, %v2325_v51 }
  0x70   :  { %802 = vmatpush.msra.mxu3 %v2024_v18  ;;  %757 = vmatpush.msra.mxu2 %v576_v11 }
  0x71   :  { %704 = vmatpush.msra.mxu1 %v2096_v45  ;;  %671 = vmatpush.msra.mxu0 %v2157_v42 }
  0x72   :  { %804 = vmatpush.msra.mxu3 %v2026_v26  ;;  %761 = vmatpush.msra.mxu2 %v582_v38 }
  0x73   :  { %706 = vmatpush.msra.mxu1 %v2098_v57  ;;  %674 = vmatpush.msra.mxu0 %v2170_v63  ;;  %v914_v63 = vsub.f32 %v2325_v51, %v913_v14 }
  0x74   :  { %806 = vmatpush.msra.mxu3 %v2028_v55  ;;  %765 = vmatpush.msra.mxu2 %v588_v47 }
  0x75   :  { %708 = vmatpush.msra.mxu1 %v2104_v19  ;;  %677 = vmatpush.msra.mxu0 %v2183_v58  ;;  %v915_v32 = vand.u32 4294901760, %v914_v63 }
  0x76   :  { %808 = vmatpush.msra.mxu3 %v2042_v62  ;;  %769 = vmatpush.msra.mxu2 %v594_v3  ;;  %v845_v62 = vld [vmem:[#allocation8 + $0x68] sm:$0xff] }
  0x77   :  { %710 = vmatpush.msra.mxu1 %v2120_v17  ;;  %680 = vmatpush.msra.mxu0 %v2193_v8  ;;  %v2304_v39 = vand.u32 4294901760, %v845_v62 }
  0x78   :  { %810 = vmatpush.msra.mxu3 %v2057_v13  ;;  %773 = vmatpush.msra.mxu2 %v600_v49  ;;  %v843_v13 = vld [vmem:[#allocation8 + $0x58] sm:$0xff] }
  0x79   :  { %712 = vmatpush.msra.mxu1 %v2133_v22  ;;  %v2308_v41 = vand.u32 4294901760, %v843_v13  ;;  %853 = vmatpush.msrb.mxu0 %v2300_v4 }
  0x7a   :  { %812 = vmatpush.msra.mxu3 %v2096_v45  ;;  %777 = vmatpush.msra.mxu2 %v606_v56  ;;  %v2319_v45 = vsub.f32 %v845_v62, %v2304_v39  ;;  %v837_v56 = vld [vmem:[#allocation8 + $0x28] sm:$0xff] }
  0x7b   :  { %714 = vmatpush.msra.mxu1 %v2146_v53  ;;  %v2328_v37 = vsub.f32 %v843_v13, %v2308_v41  ;;  %855 = vmatpush.msrb.mxu0 %v2302_v25 }
  0x7c   :  { %814 = vmatpush.msra.mxu3 %v2098_v57  ;;  %781 = vmatpush.msra.mxu2 %v612_v2  ;;  %v2322_v57 = vand.u32 4294901760, %v841_v43  ;;  %v907_v47 = vand.u32 4294901760, %v2319_v45 }
  0x7d   :  { %716 = vmatpush.msra.mxu1 %v2159_v5  ;;  %857 = vmatpush.msrb.mxu0 %v2304_v39 }
  0x7e   :  { %816 = vmatpush.msra.mxu3 %v2104_v19  ;;  %785 = vmatpush.msra.mxu2 %v618_v20  ;;  %v840_v19 = vld [vmem:[#allocation8 + $0x40] sm:$0xff]  ;;  %v2340_v3 = vsub.f32 %v841_v43, %v2322_v57  ;;  %v908_v21 = vsub.f32 %v2319_v45, %v907_v47 }
  0x7f   :  { %718 = vmatpush.msra.mxu1 %v2172_v28  ;;  %v2342_v42 = vand.u32 4294901760, %v840_v19  ;;  %859 = vmatpush.msrb.mxu0 %v2306_v30 }
  0x80   :  { %818 = vmatpush.msra.mxu3 %v2120_v17  ;;  %789 = vmatpush.msra.mxu2 %v624_v31  ;;  %v2331_v17 = vsub.f32 %v842_v29, %v2310_v9  ;;  %v931_v8 = vand.u32 4294901760, %v2340_v3  ;;  %v909_v20 = vand.u32 4294901760, %v908_v21  ;;  %v2371_v31 = vand.u32 4294901760, %v837_v56 }
  0x81   :  { %v2360_v50 = vsub.f32 %v840_v19, %v2342_v42  ;;  %861 = vmatpush.msrb.mxu0 %v2308_v41 }
  0x82   :  { %820 = vmatpush.msra.mxu3 %v2133_v22  ;;  %v901_v22 = vand.u32 4294901760, %v2316_v10  ;;  %v2394_v59 = vsub.f32 %v837_v56, %v2371_v31 }
  0x83   :  { %v937_v35 = vand.u32 4294901760, %v2360_v50  ;;  %863 = vmatpush.msrb.mxu0 %v2310_v9 }
  0x84   :  { %822 = vmatpush.msra.mxu3 %v2146_v53  ;;  %v919_v53 = vand.u32 4294901760, %v2328_v37  ;;  %v902_v44 = vsub.f32 %v2316_v10, %v901_v22 }
  0x85   :  { %865 = vmatpush.msrb.mxu0 %v2322_v57  ;;  %v938_v7 = vsub.f32 %v2360_v50, %v937_v35 }
  0x86   :  { %824 = vmatpush.msra.mxu3 %v2159_v5  ;;  %v896_v5 = vsub.f32 %v2313_v24, %v895_v48  ;;  %v903_v52 = vand.u32 4294901760, %v902_v44  ;;  %v920_v2 = vsub.f32 %v2328_v37, %v919_v53  ;;  %v2417_v44 = vsub.f32 %v835_v34, %v2396_v61 }
  0x87   :  { %867 = vmatpush.msrb.mxu0 %v2342_v42 }
  0x88   :  { %826 = vmatpush.msra.mxu3 %v2172_v28  ;;  %v925_v28 = vand.u32 4294901760, %v2331_v17  ;;  %v897_v58 = vand.u32 4294901760, %v896_v5  ;;  %v955_v5 = vand.u32 4294901760, %v2394_v59 }
  0x89   :  { %869 = vmatpush.msrb.mxu0 %v2367_v0 }
  0x8a   :  { %898 = vmatpush.msrb.mxu1 %v897_v58  ;;  %v926_v1 = vsub.f32 %v2331_v17, %v925_v28 }
  0x8b   :  { %871 = vmatpush.msrb.mxu0 %v2369_v60 }
  0x8c   :  { %904 = vmatpush.msrb.mxu1 %v903_v52  ;;  %v956_v52 = vsub.f32 %v2394_v59, %v955_v5 }
  0x8d   :  { %873 = vmatpush.msrb.mxu0 %v2371_v31 }
  0x8e   :  { %910 = vmatpush.msrb.mxu1 %v909_v20 }
  0x90   :  { %916 = vmatpush.msrb.mxu1 %v915_v32 }
  0xb9   :  { %v168_v23 = vpop.f32.mrf.mxu0 }
  0xba   :  { %v169_v16 = vadd.f32 %v1582_v15, %v168_v23  ;;  %v2382_v15 = vsub.f32 %v838_v40, %v2369_v60  ;;  %v2384_v23 = vand.u32 4294901760, %v836_v54 }
  0xbc   :  { %v949_v13 = vand.u32 4294901760, %v2382_v15  ;;  %v2406_v29 = vsub.f32 %v836_v54, %v2384_v23  ;;  %875 = vmatpush.msrb.mxu0 %v2384_v23 }
  0xbd   :  { %v269_v18 = vpop.f32.mrf.mxu1  ;;  %v362_v6 = vpop.f32.mrf.mxu3 }
  0xbe   :  { %v270_v26 = vadd.f32 %v269_v18, %v169_v16  ;;  %v932_v18 = vsub.f32 %v2340_v3, %v931_v8  ;;  %v950_v63 = vsub.f32 %v2382_v15, %v949_v13  ;;  %v961_v46 = vand.u32 4294901760, %v2406_v29  ;;  %877 = vmatpush.msrb.mxu0 %v2396_v61 }
  0xbf   :  { %v323_v55 = vpop.f32.mrf.mxu2 }
  0xc0   :  { %v324_v27 = vadd.f32 %v323_v55, %v270_v26  ;;  %v834_v26 = vld [vmem:[#allocation8 + $0x10] sm:$0xff]  ;;  %v921_v55 = vand.u32 4294901760, %v920_v2  ;;  %v967_v2 = vand.u32 4294901760, %v2417_v44  ;;  %v951_v54 = vand.u32 4294901760, %v950_v63 }
  0xc1   :  { %v2408_v43 = vand.u32 4294901760, %v834_v26 }
  0xc2   :  { %v363_v11 = vadd.f32 %v362_v6, %v324_v27  ;;  %v943_v27 = vand.u32 4294901760, %v2378_v36  ;;  %v927_v6 = vand.u32 4294901760, %v926_v1  ;;  %922 = vmatpush.msrb.mxu1 %v921_v55  ;;  %v968_v32 = vsub.f32 %v2417_v44, %v967_v2 }
  0xc3   :  { %v2426_v40 = vsub.f32 %v834_v26, %v2408_v43  ;;  %879 = vmatpush.msrb.mxu0 %v2408_v43 }
  0xc4   :  { %928 = vmatpush.msrb.mxu1 %v927_v6 }
  0xc5   :  { %v973_v20 = vand.u32 4294901760, %v2426_v40 }
  0xc7   :  { %v974_v34 = vsub.f32 %v2426_v40, %v973_v20 }
  0xc9   :  { %v975_v26 = vand.u32 4294901760, %v974_v34 }
  0xd5   :  { %v431_v38 = vpop.f32.mrf.mxu0 }
  0xd6   :  { %v432_v49 = vadd.f32 %v431_v38, %v363_v11  ;;  %v933_v11 = vand.u32 4294901760, %v932_v18  ;;  %v944_v38 = vsub.f32 %v2378_v36, %v943_v27  ;;  %v969_v18 = vand.u32 4294901760, %v968_v32  ;;  %v1197_v32 = vld [vmem:[#allocation10 + $0x20] sm:$0xff] }
  0xd8   :  { %934 = vmatpush.msrb.mxu1 %v933_v11  ;;  %v945_v58 = vand.u32 4294901760, %v944_v38 }
  0xdd   :  { %v468_v33 = vpop.f32.mrf.mxu1 }
  0xde   :  { %v469_v12 = vadd.f32 %v468_v33, %v432_v49  ;;  %v939_v49 = vand.u32 4294901760, %v938_v7  ;;  %v962_v33 = vsub.f32 %v2406_v29, %v961_v46 }
  0xe0   :  { %v2386_v16 = vand.u32 4294901760, %v469_v12  ;;  %940 = vmatpush.msrb.mxu1 %v939_v49  ;;  %v963_v1 = vand.u32 4294901760, %v962_v33 }
  0xe2   :  { %v524_v62 = vsub.f32 %v469_v12, %v2386_v16  ;;  %629 = vmatmul.f32.vlgmr.msrb.gmra.mxu3 %v2386_v16  ;;  %946 = vmatpush.msrb.mxu1 %v945_v58  ;;  %v957_v12 = vand.u32 4294901760, %v956_v52  ;;  %v1200_v58 = vld [vmem:[#allocation10 + $0x38] sm:$0xff]  ;;  %v1199_v52 = vld [vmem:[#allocation10 + $0x30] sm:$0xff] }
  0xe3   :  { %1049 = vmatpush.msrb.mxu3 %v2300_v4 }
  0xe4   :  { %v525_v19 = vand.u32 4294901760, %v524_v62  ;;  %683 = vmatmul.f32.vlgmr.msra.gmra.mxu0 %v524_v62  ;;  %952 = vmatpush.msrb.mxu1 %v951_v54 }
  0xe5   :  { %1051 = vmatpush.msrb.mxu3 %v2302_v25 }
  0xe6   :  { %722 = vmatmul.f32.vlgmr.msra.gmra.mxu1 %v525_v19  ;;  %v526_v21 = vsub.f32 %v524_v62, %v525_v19  ;;  %v832_v62 = vld [vmem:[#allocation8] sm:$0xff] }
  0xe7   :  { %1053 = vmatpush.msrb.mxu3 %v2304_v39  ;;  %958 = vmatpush.msrb.mxu1 %v957_v12  ;;  %v882_v7 = vand.u32 4294901760, %v832_v62  ;;  %v1198_v12 = vld [vmem:[#allocation10 + $0x28] sm:$0xff] }
  0xe8   :  { %v527_v56 = vand.u32 4294901760, %v526_v21 }
  0xe9   :  { %1055 = vmatpush.msrb.mxu3 %v2306_v30  ;;  %964 = vmatpush.msrb.mxu1 %v963_v1  ;;  %v984_v11 = vsub.f32 %v832_v62, %v882_v7  ;;  %v2583_v62 = vand.u32 4294901760, %v1200_v58 }
  0xea   :  { %528 = vmatmul.f32.vlgmr.msrb.gmra.mxu2 %v527_v56  ;;  %828 = vmatmul.f32.vlgmr.msra.gmra.mxu3 %v2386_v16 }
  0xeb   :  { %996 = vmatpush.msrb.mxu2 %v2313_v24  ;;  %1057 = vmatpush.msrb.mxu3 %v2308_v41  ;;  %v985_v21 = vand.u32 4294901760, %v984_v11 }
  0xec   :  { %970 = vmatpush.msrb.mxu1 %v969_v18 }
  0xed   :  { %999 = vmatpush.msrb.mxu2 %v2316_v10  ;;  %1059 = vmatpush.msrb.mxu3 %v2310_v9  ;;  %v986_v63 = vsub.f32 %v984_v11, %v985_v21 }
  0xee   :  { %976 = vmatpush.msrb.mxu1 %v975_v26 }
  0xef   :  { %1002 = vmatpush.msrb.mxu2 %v2319_v45  ;;  %1061 = vmatpush.msrb.mxu3 %v2322_v57  ;;  %v987_v56 = vand.u32 4294901760, %v986_v63 }
  0xf1   :  { %1005 = vmatpush.msrb.mxu2 %v2325_v51  ;;  %1063 = vmatpush.msrb.mxu3 %v2342_v42  ;;  %v1204_v51 = vld [vmem:[#allocation10 + $0x58] sm:$0xff] }
  0xf2   :  { %791 = vmatmul.f32.vlgmr.msra.gmra.mxu2 %v2386_v16  ;;  %v833_v16 = vld [vmem:[#allocation8 + $0x8] sm:$0xff] }
  0xf3   :  { %1008 = vmatpush.msrb.mxu2 %v2328_v37  ;;  %1065 = vmatpush.msrb.mxu3 %v2367_v0  ;;  %v880_v55 = vand.u32 4294901760, %v833_v16  ;;  %v1203_v37 = vld [vmem:[#allocation10 + $0x50] sm:$0xff] }
  0xf5   :  { %1011 = vmatpush.msrb.mxu2 %v2331_v17  ;;  %1067 = vmatpush.msrb.mxu3 %v2369_v60  ;;  %v978_v6 = vsub.f32 %v833_v16, %v880_v55 }
  0xf6   :  { %881 = vmatpush.msrb.mxu0 %v880_v55 }
  0xf7   :  { %1014 = vmatpush.msrb.mxu2 %v2340_v3  ;;  %1069 = vmatpush.msrb.mxu3 %v2371_v31  ;;  %v979_v19 = vand.u32 4294901760, %v978_v6 }
  0xf8   :  { %883 = vmatpush.msrb.mxu0 %v882_v7 }
  0xf9   :  { %1017 = vmatpush.msrb.mxu2 %v2360_v50  ;;  %1071 = vmatpush.msrb.mxu3 %v2384_v23  ;;  %v980_v38 = vsub.f32 %v978_v6, %v979_v19 }
  0xfa   :  { %1090 = vmatpush.msra.mxu0 %v895_v48 }
  0xfb   :  { %1020 = vmatpush.msrb.mxu2 %v2378_v36  ;;  %1073 = vmatpush.msrb.mxu3 %v2396_v61  ;;  %v981_v49 = vand.u32 4294901760, %v980_v38  ;;  %v2592_v38 = vand.u32 4294901760, %v1197_v32 }
  0xfc   :  { %1094 = vmatpush.msra.mxu0 %v901_v22  ;;  %v2527_v22 = vand.u32 4294901760, %v1204_v51 }
  0xfd   :  { %1023 = vmatpush.msrb.mxu2 %v2382_v15  ;;  %1075 = vmatpush.msrb.mxu3 %v2408_v43 }
  0xfe   :  { %1098 = vmatpush.msra.mxu0 %v907_v47  ;;  %982 = vmatpush.msrb.mxu1 %v981_v49  ;;  %v2529_v47 = vand.u32 4294901760, %v1203_v37 }
  0xff   :  { %1026 = vmatpush.msrb.mxu2 %v2394_v59  ;;  %1077 = vmatpush.msrb.mxu3 %v880_v55 }
 0x100   :  { %1102 = vmatpush.msra.mxu0 %v913_v14  ;;  %988 = vmatpush.msrb.mxu1 %v987_v56  ;;  %v1202_v14 = vld [vmem:[#allocation10 + $0x48] sm:$0xff]  ;;  %v2598_v56 = vsub.f32 %v1200_v58, %v2583_v62 }
 0x101   :  { %1029 = vmatpush.msrb.mxu2 %v2406_v29  ;;  %1079 = vmatpush.msrb.mxu3 %v882_v7 }
 0x102   :  { %1157 = vmatpush.msra.mxu1 %v2300_v4  ;;  %1106 = vmatpush.msra.mxu0 %v919_v53  ;;  %v1583_v4 = vld [vmem:[%s2778_s4] ss:$0 sm:$0xff] }
 0x103   :  { %1032 = vmatpush.msrb.mxu2 %v2417_v44 }
 0x104   :  { %1159 = vmatpush.msra.mxu1 %v2302_v25  ;;  %1110 = vmatpush.msra.mxu0 %v925_v28  ;;  %v1208_v25 = vld [vmem:[#allocation10 + $0x78] sm:$0xff]  ;;  %v2541_v28 = vand.u32 4294901760, %v1202_v14 }
 0x105   :  { %1035 = vmatpush.msrb.mxu2 %v2426_v40  ;;  %v2519_v24 = vand.u32 4294901760, %v1208_v25  ;;  %v1201_v40 = vld [vmem:[#allocation10 + $0x40] sm:$0xff] }
 0x106   :  { %1161 = vmatpush.msra.mxu1 %v2304_v39  ;;  %1114 = vmatpush.msra.mxu0 %v931_v8  ;;  %v1207_v39 = vld [vmem:[#allocation10 + $0x70] sm:$0xff] }
 0x107   :  { %1038 = vmatpush.msrb.mxu2 %v978_v6  ;;  %v2521_v10 = vand.u32 4294901760, %v1207_v39  ;;  %v2532_v53 = vsub.f32 %v1208_v25, %v2519_v24  ;;  %v2585_v6 = vand.u32 4294901760, %v1199_v52  ;;  %v1195_v25 = vld [vmem:[#allocation10 + $0x10] sm:$0xff] }
 0x108   :  { %1163 = vmatpush.msra.mxu1 %v2306_v30  ;;  %1118 = vmatpush.msra.mxu0 %v937_v35  ;;  %v1206_v30 = vld [vmem:[#allocation10 + $0x68] sm:$0xff] }
 0x109   :  { %1041 = vmatpush.msrb.mxu2 %v984_v11  ;;  %v2523_v45 = vand.u32 4294901760, %v1206_v30  ;;  %v2535_v3 = vsub.f32 %v1207_v39, %v2521_v10  ;;  %v1256_v35 = vand.u32 4294901760, %v2532_v53  ;;  %v2590_v11 = vand.u32 4294901760, %v1198_v12 }
 0x10a   :  { %1165 = vmatpush.msra.mxu1 %v2308_v41  ;;  %1122 = vmatpush.msra.mxu0 %v943_v27 }
 0x10b   :  { %1214 = vmatpush.msra.mxu2 %v2519_v24  ;;  %v1262_v36 = vand.u32 4294901760, %v2535_v3  ;;  %v1257_v29 = vsub.f32 %v2532_v53, %v1256_v35 }
 0x10c   :  { %1167 = vmatpush.msra.mxu1 %v2310_v9  ;;  %1126 = vmatpush.msra.mxu0 %v949_v13 }
 0x10d   :  { %1216 = vmatpush.msra.mxu2 %v2521_v10  ;;  %v1258_v54 = vand.u32 4294901760, %v1257_v29 }
 0x10e   :  { %1169 = vmatpush.msra.mxu1 %v2322_v57  ;;  %1130 = vmatpush.msra.mxu0 %v955_v5  ;;  %v1205_v57 = vld [vmem:[#allocation10 + $0x60] sm:$0xff] }
 0x10f   :  { %v2525_v48 = vand.u32 4294901760, %v1205_v57  ;;  %1218 = vmatpush.msra.mxu2 %v2523_v45  ;;  %1259 = vmatpush.msra.mxu3 %v1258_v54 }
 0x110   :  { %1171 = vmatpush.msra.mxu1 %v2342_v42  ;;  %1134 = vmatpush.msra.mxu0 %v961_v46  ;;  %v2538_v42 = vsub.f32 %v1206_v30, %v2523_v45 }
 0x111   :  { %v2544_v8 = vsub.f32 %v1205_v57, %v2525_v48  ;;  %1220 = vmatpush.msra.mxu2 %v2525_v48  ;;  %v1304_v57 = vand.u32 4294901760, %v2598_v56 }
 0x112   :  { %1173 = vmatpush.msra.mxu1 %v2367_v0  ;;  %1138 = vmatpush.msra.mxu0 %v967_v2  ;;  %v2547_v0 = vsub.f32 %v1204_v51, %v2527_v22  ;;  %v1268_v15 = vand.u32 4294901760, %v2538_v42  ;;  %v2613_v51 = vsub.f32 %v1198_v12, %v2590_v11 }
 0x113   :  { %v1274_v27 = vand.u32 4294901760, %v2544_v8  ;;  %1222 = vmatpush.msra.mxu2 %v2527_v22 }
 0x114   :  { %1175 = vmatpush.msra.mxu1 %v2369_v60  ;;  %1142 = vmatpush.msra.mxu0 %v973_v20  ;;  %v2550_v60 = vsub.f32 %v1203_v37, %v2529_v47  ;;  %v1280_v59 = vand.u32 4294901760, %v2547_v0  ;;  %v1269_v5 = vsub.f32 %v2538_v42, %v1268_v15  ;;  %v1316_v58 = vand.u32 4294901760, %v2613_v51 }
 0x115   :  { %v1275_v20 = vsub.f32 %v2544_v8, %v1274_v27  ;;  %1224 = vmatpush.msra.mxu2 %v2529_v47 }
 0x116   :  { %1177 = vmatpush.msra.mxu1 %v2371_v31  ;;  %1146 = vmatpush.msra.mxu0 %v979_v19  ;;  %v1286_v46 = vand.u32 4294901760, %v2550_v60  ;;  %v1281_v34 = vsub.f32 %v2547_v0, %v1280_v59  ;;  %v1270_v16 = vand.u32 4294901760, %v1269_v5  ;;  %v1193_v5 = vld [vmem:[#allocation10] sm:$0xff] }
 0x117   :  { %v1276_v49 = vand.u32 4294901760, %v1275_v20  ;;  %1226 = vmatpush.msra.mxu2 %v2541_v28 }
 0x118   :  { %1179 = vmatpush.msra.mxu1 %v2384_v23  ;;  %1150 = vmatpush.msra.mxu0 %v985_v21  ;;  %v1287_v19 = vsub.f32 %v2550_v60, %v1286_v46  ;;  %v1196_v21 = vld [vmem:[#allocation10 + $0x18] sm:$0xff]  ;;  %v1282_v30 = vand.u32 4294901760, %v1281_v34 }
 0x119   :  { %v2615_v37 = vand.u32 4294901760, %v1196_v21 }
 0x11a   :  { %1181 = vmatpush.msra.mxu1 %v2396_v61  ;;  %v2559_v61 = vsub.f32 %v1202_v14, %v2541_v28  ;;  %v2620_v14 = vsub.f32 %v1197_v32, %v2592_v38 }
 0x11c   :  { %1183 = vmatpush.msra.mxu1 %v2408_v43  ;;  %v1263_v43 = vsub.f32 %v2535_v3, %v1262_v36  ;;  %v1292_v18 = vand.u32 4294901760, %v2559_v61  ;;  %v1322_v54 = vand.u32 4294901760, %v2620_v14 }
 0x11e   :  { %1185 = vmatpush.msra.mxu1 %v880_v55  ;;  %v1264_v33 = vand.u32 4294901760, %v1263_v43  ;;  %v2580_v55 = vand.u32 4294901760, %v1201_v40  ;;  %v1194_v43 = vld [vmem:[#allocation10 + $0x8] sm:$0xff] }
 0x11f   :  { %v2647_v32 = vand.u32 4294901760, %v1194_v43 }
 0x120   :  { %1187 = vmatpush.msra.mxu1 %v882_v7  ;;  %1265 = vmatpush.msra.mxu3 %v1264_v33  ;;  %v2595_v63 = vsub.f32 %v1201_v40, %v2580_v55  ;;  %v1305_v40 = vsub.f32 %v2598_v56, %v1304_v57 }
 0x121   :  { %1228 = vmatpush.msra.mxu2 %v2580_v55 }
 0x122   :  { %1271 = vmatpush.msra.mxu3 %v1270_v16  ;;  %v1317_v16 = vsub.f32 %v2613_v51, %v1316_v58 }
 0x123   :  { %1230 = vmatpush.msra.mxu2 %v2583_v62 }
 0x124   :  { %1277 = vmatpush.msra.mxu3 %v1276_v49  ;;  %v1323_v49 = vsub.f32 %v2620_v14, %v1322_v54 }
 0x125   :  { %1232 = vmatpush.msra.mxu2 %v2585_v6 }
 0x126   :  { %1283 = vmatpush.msra.mxu3 %v1282_v30 }
 0x127   :  { %1234 = vmatpush.msra.mxu2 %v2590_v11 }
 0x129   :  { %1236 = vmatpush.msra.mxu2 %v2592_v38 }
 0x12b   :  { %1238 = vmatpush.msra.mxu2 %v2615_v37 }
 0x161   :  { %v684_v31 = vpop.f32.mrf.mxu0 }
 0x163   :  { %v723_v13 = vpop.f32.mrf.mxu1 }
 0x165   :  { %v630_v41 = vpop.f32.mrf.mxu3 }
 0x16d   :  { %v529_v9 = vpop.f32.mrf.mxu2  ;;  %v829_v26 = vpop.f32.mrf.mxu3 }
 0x16e   :  { %v530_v17 = vadd.f32 %v1583_v4, %v529_v9  ;;  %v2602_v4 = vsub.f32 %v1199_v52, %v2585_v6  ;;  %v1298_v9 = vand.u32 4294901760, %v2595_v63  ;;  %v2636_v52 = vsub.f32 %v1196_v21, %v2615_v37 }
 0x170   :  { %v631_v50 = vadd.f32 %v630_v41, %v530_v17  ;;  %v1293_v41 = vsub.f32 %v2559_v61, %v1292_v18 }
 0x172   :  { %v685_v23 = vadd.f32 %v684_v31, %v631_v50  ;;  %v2622_v50 = vand.u32 4294901760, %v1195_v25  ;;  %v1288_v31 = vand.u32 4294901760, %v1287_v19  ;;  %v2658_v19 = vsub.f32 %v1194_v43, %v2647_v32 }
 0x174   :  { %v724_v44 = vadd.f32 %v723_v13, %v685_v23  ;;  %v1299_v23 = vsub.f32 %v2595_v63, %v1298_v9  ;;  %v1310_v13 = vand.u32 4294901760, %v2602_v4  ;;  %v2640_v33 = vsub.f32 %v1195_v25, %v2622_v50  ;;  %1289 = vmatpush.msra.mxu3 %v1288_v31  ;;  %1240 = vmatpush.msra.mxu2 %v2622_v50 }
 0x175   :  { %v792_v2 = vpop.f32.mrf.mxu2  ;;  %v1340_v31 = vand.u32 4294901760, %v2658_v19 }
 0x176   :  { %v793_v1 = vadd.f32 %v792_v2, %v724_v44  ;;  %v1294_v44 = vand.u32 4294901760, %v1293_v41  ;;  %v1300_v20 = vand.u32 4294901760, %v1299_v23  ;;  %v1311_v12 = vsub.f32 %v2602_v4, %v1310_v13  ;;  %1242 = vmatpush.msra.mxu2 %v2647_v32 }
 0x177   :  { %v1334_v25 = vand.u32 4294901760, %v2640_v33  ;;  %v1318_v41 = vand.u32 4294901760, %v1317_v16  ;;  %v1324_v23 = vand.u32 4294901760, %v1323_v49 }
 0x178   :  { %v830_v7 = vadd.f32 %v829_v26, %v793_v1  ;;  %v2649_v1 = vand.u32 4294901760, %v1193_v5  ;;  %1295 = vmatpush.msra.mxu3 %v1294_v44  ;;  %v1306_v26 = vand.u32 4294901760, %v1305_v40  ;;  %v1312_v21 = vand.u32 4294901760, %v1311_v12 }
 0x179   :  { %v1341_v44 = vsub.f32 %v2658_v19, %v1340_v31 }
 0x17a   :  { %v2604_v39 = vand.u32 4294901760, %v830_v7  ;;  %1301 = vmatpush.msra.mxu3 %v1300_v20  ;;  %v2667_v30 = vsub.f32 %v1193_v5, %v2649_v1  ;;  %1244 = vmatpush.msra.mxu2 %v2649_v1 }
 0x17b   :  { %v1342_v20 = vand.u32 4294901760, %v1341_v44 }
 0x17c   :  { %v885_v17 = vsub.f32 %v830_v7, %v2604_v39  ;;  %990 = vmatmul.f32.vlgmr.msrb.gmra.mxu1 %v2604_v39  ;;  %v1328_v7 = vand.u32 4294901760, %v2636_v52  ;;  %1307 = vmatpush.msra.mxu3 %v1306_v26  ;;  %v1346_v43 = vand.u32 4294901760, %v2667_v30 }
 0x17d   :  { %1410 = vmatpush.msrb.mxu1 %v2519_v24 }
 0x17e   :  { %1044 = vmatmul.f32.vlgmr.msrb.gmra.mxu2 %v885_v17  ;;  %v886_v29 = vand.u32 4294901760, %v885_v17  ;;  %1313 = vmatpush.msra.mxu3 %v1312_v21 }
 0x17f   :  { %1412 = vmatpush.msrb.mxu1 %v2521_v10  ;;  %1451 = vmatpush.msrb.mxu2 %v1256_v35 }
 0x180   :  { %1083 = vmatmul.f32.vlgmr.msrb.gmra.mxu3 %v886_v29  ;;  %v887_v2 = vsub.f32 %v885_v17, %v886_v29  ;;  %v1329_v17 = vsub.f32 %v2636_v52, %v1328_v7  ;;  %v1335_v29 = vsub.f32 %v2640_v33, %v1334_v25 }
 0x181   :  { %1414 = vmatpush.msrb.mxu1 %v2523_v45  ;;  %1319 = vmatpush.msra.mxu3 %v1318_v41 }
 0x182   :  { %v888_v34 = vand.u32 4294901760, %v887_v2  ;;  %v1330_v5 = vand.u32 4294901760, %v1329_v17  ;;  %v1336_v40 = vand.u32 4294901760, %v1335_v29  ;;  %v1347_v2 = vsub.f32 %v2667_v30, %v1346_v43  ;;  %1455 = vmatpush.msrb.mxu2 %v1262_v36 }
 0x183   :  { %1416 = vmatpush.msrb.mxu1 %v2525_v48  ;;  %1325 = vmatpush.msra.mxu3 %v1324_v23 }
 0x184   :  { %889 = vmatmul.f32.vlgmr.msrb.gmra.mxu0 %v888_v34  ;;  %1189 = vmatmul.f32.vlgmr.msra.gmra.mxu1 %v2604_v39 }
 0x185   :  { %1357 = vmatpush.msrb.mxu0 %v2532_v53  ;;  %1418 = vmatpush.msrb.mxu1 %v2527_v22 }
 0x186   :  { %1331 = vmatpush.msra.mxu3 %v1330_v5  ;;  %1459 = vmatpush.msrb.mxu2 %v1268_v15 }
 0x187   :  { %1360 = vmatpush.msrb.mxu0 %v2535_v3  ;;  %1420 = vmatpush.msrb.mxu1 %v2529_v47 }
 0x188   :  { %1337 = vmatpush.msra.mxu3 %v1336_v40  ;;  %1463 = vmatpush.msrb.mxu2 %v1274_v27 }
 0x189   :  { %1363 = vmatpush.msrb.mxu0 %v2538_v42  ;;  %1422 = vmatpush.msrb.mxu1 %v2541_v28 }
 0x18a   :  { %1343 = vmatpush.msra.mxu3 %v1342_v20  ;;  %1467 = vmatpush.msrb.mxu2 %v1280_v59 }
 0x18b   :  { %1366 = vmatpush.msrb.mxu0 %v2544_v8  ;;  %1424 = vmatpush.msrb.mxu1 %v2580_v55 }
 0x18c   :  { %1152 = vmatmul.f32.vlgmr.msra.gmra.mxu0 %v2604_v39  ;;  %v1348_v39 = vand.u32 4294901760, %v1347_v2  ;;  %1471 = vmatpush.msrb.mxu2 %v1286_v46 }
 0x18d   :  { %1369 = vmatpush.msrb.mxu0 %v2547_v0  ;;  %1426 = vmatpush.msrb.mxu1 %v2583_v62 }
 0x18e   :  { %1349 = vmatpush.msra.mxu3 %v1348_v39  ;;  %1475 = vmatpush.msrb.mxu2 %v1292_v18 }
 0x18f   :  { %1372 = vmatpush.msrb.mxu0 %v2550_v60  ;;  %1428 = vmatpush.msrb.mxu1 %v2585_v6 }
 0x190   :  { %1518 = vmatpush.msrb.mxu3 %v2519_v24  ;;  %1479 = vmatpush.msrb.mxu2 %v1298_v9  ;;  %v1584_v24 = vld [vmem:[%s2780_s6] ss:$0 sm:$0xff] }
 0x191   :  { %1375 = vmatpush.msrb.mxu0 %v2559_v61  ;;  %1430 = vmatpush.msrb.mxu1 %v2590_v11  ;;  %v1585_v61 = vld [vmem:[%s2782_s8] ss:$0 sm:$0xff] }
 0x192   :  { %1520 = vmatpush.msrb.mxu3 %v2521_v10  ;;  %1483 = vmatpush.msrb.mxu2 %v1304_v57 }
 0x193   :  { %1378 = vmatpush.msrb.mxu0 %v2595_v63  ;;  %1432 = vmatpush.msrb.mxu1 %v2592_v38 }
 0x194   :  { %1522 = vmatpush.msrb.mxu3 %v2523_v45  ;;  %1487 = vmatpush.msrb.mxu2 %v1310_v13 }
 0x195   :  { %1381 = vmatpush.msrb.mxu0 %v2598_v56  ;;  %1434 = vmatpush.msrb.mxu1 %v2615_v37 }
 0x196   :  { %1524 = vmatpush.msrb.mxu3 %v2525_v48  ;;  %1491 = vmatpush.msrb.mxu2 %v1316_v58 }
 0x197   :  { %1384 = vmatpush.msrb.mxu0 %v2602_v4  ;;  %1436 = vmatpush.msrb.mxu1 %v2622_v50 }
 0x198   :  { %1526 = vmatpush.msrb.mxu3 %v2527_v22  ;;  %1495 = vmatpush.msrb.mxu2 %v1322_v54 }
 0x199   :  { %1387 = vmatpush.msrb.mxu0 %v2613_v51  ;;  %1438 = vmatpush.msrb.mxu1 %v2647_v32 }
 0x19a   :  { %1528 = vmatpush.msrb.mxu3 %v2529_v47  ;;  %1499 = vmatpush.msrb.mxu2 %v1328_v7 }
 0x19b   :  { %1390 = vmatpush.msrb.mxu0 %v2620_v14  ;;  %1440 = vmatpush.msrb.mxu1 %v2649_v1 }
 0x19c   :  { %1530 = vmatpush.msrb.mxu3 %v2541_v28  ;;  %1503 = vmatpush.msrb.mxu2 %v1334_v25 }
 0x19d   :  { %1393 = vmatpush.msrb.mxu0 %v2636_v52 }
 0x19e   :  { %1532 = vmatpush.msrb.mxu3 %v2580_v55  ;;  %1507 = vmatpush.msrb.mxu2 %v1340_v31 }
 0x19f   :  { %1396 = vmatpush.msrb.mxu0 %v2640_v33 }
 0x1a0   :  { %1534 = vmatpush.msrb.mxu3 %v2583_v62  ;;  %1511 = vmatpush.msrb.mxu2 %v1346_v43 }
 0x1a1   :  { %1399 = vmatpush.msrb.mxu0 %v2658_v19 }
 0x1a2   :  { %1536 = vmatpush.msrb.mxu3 %v2585_v6 }
 0x1a3   :  { %1402 = vmatpush.msrb.mxu0 %v2667_v30 }
 0x1a4   :  { %1538 = vmatpush.msrb.mxu3 %v2590_v11 }
 0x1a6   :  { %1540 = vmatpush.msrb.mxu3 %v2592_v38 }
 0x1a8   :  { %1542 = vmatpush.msrb.mxu3 %v2615_v37 }
 0x1aa   :  { %1544 = vmatpush.msrb.mxu3 %v2622_v50 }
 0x1ac   :  { %1546 = vmatpush.msrb.mxu3 %v2647_v32 }
 0x1ae   :  { %1548 = vmatpush.msrb.mxu3 %v2649_v1 }
 0x1f9   :  { %v991_v10 = vpop.f32.mrf.mxu1 }
 0x201   :  { %v890_v45 = vpop.f32.mrf.mxu0  ;;  %v1045_v47 = vpop.f32.mrf.mxu2 }
 0x202   :  { %v891_v48 = vadd.f32 %v1584_v24, %v890_v45  ;;  %v1190_v0 = vpop.f32.mrf.mxu1 }
 0x203   :  { %v1084_v3 = vpop.f32.mrf.mxu3 }
 0x204   :  { %v992_v22 = vadd.f32 %v991_v10, %v891_v48 }
 0x206   :  { %v1046_v53 = vadd.f32 %v1045_v47, %v992_v22 }
 0x208   :  { %v1085_v42 = vadd.f32 %v1084_v3, %v1046_v53 }
 0x209   :  { %v1153_v28 = vpop.f32.mrf.mxu0 }
 0x20a   :  { %v1154_v8 = vadd.f32 %v1153_v28, %v1085_v42 }
 0x20c   :  { %v1191_v60 = vadd.f32 %v1190_v0, %v1154_v8 }
 0x20e   :  { %v1245_v35 = vand.u32 4294901760, %v1191_v60 }
 0x210   :  { %v1246_v36 = vsub.f32 %v1191_v60, %v1245_v35  ;;  %1351 = vmatmul.f32.vlgmr.msra.gmra.mxu3 %v1245_v35 }
 0x212   :  { %1405 = vmatmul.f32.vlgmr.msrb.gmra.mxu0 %v1246_v36  ;;  %v1247_v15 = vand.u32 4294901760, %v1246_v36 }
 0x214   :  { %1444 = vmatmul.f32.vlgmr.msrb.gmra.mxu1 %v1247_v15  ;;  %v1248_v27 = vsub.f32 %v1246_v36, %v1247_v15 }
 0x216   :  { %v1249_v59 = vand.u32 4294901760, %v1248_v27 }
 0x218   :  { %1250 = vmatmul.f32.vlgmr.msra.gmra.mxu2 %v1249_v59  ;;  %1550 = vmatmul.f32.vlgmr.msrb.gmra.mxu3 %v1245_v35 }
 0x220   :  { %1513 = vmatmul.f32.vlgmr.msrb.gmra.mxu2 %v1245_v35 }
 0x28f   :  { %v1406_v6 = vpop.f32.mrf.mxu0 }
 0x291   :  { %v1445_v38 = vpop.f32.mrf.mxu1 }
 0x293   :  { %v1352_v46 = vpop.f32.mrf.mxu3 }
 0x29b   :  { %v1251_v18 = vpop.f32.mrf.mxu2  ;;  %v1551_v9 = vpop.f32.mrf.mxu3 }
 0x29c   :  { %v1252_v55 = vadd.f32 %v1585_v61, %v1251_v18 }
 0x29e   :  { %v1353_v62 = vadd.f32 %v1352_v46, %v1252_v55 }
 0x2a0   :  { %v1407_v11 = vadd.f32 %v1406_v6, %v1353_v62 }
 0x2a2   :  { %v1446_v63 = vadd.f32 %v1445_v38, %v1407_v11 }
 0x2a3   :  { %v1514_v56 = vpop.f32.mrf.mxu2 }
 0x2a4   :  { %v1515_v4 = vadd.f32 %v1514_v56, %v1446_v63 }
 0x2a6   :  { %v1552_v57 = vadd.f32 %v1551_v9, %v1515_v4 }
 0x2a8   :  { %1554 = vst [vmem:[#allocation11] sm:$0xff] %v1552_v57 }
 0x2a9   :  { %1565 = dma.vmem_to_hbm [thread:$0]  %s1561_s16, 128, %s1563_s19, [#allocation4]  }
 0x2aa   :  { %1736 = dma.done.wait [#allocation4], 128  }
 0x2ab   :  { %1737 = vsyncadd [#allocation4], 4294967168 }
 0x2ac   :  { %1570 = vsyncpa [#allocation3], 1 }
 0x2ad   :  { %1571 = vsyncpa [#allocation6], 1 }
 0x2ae   :  { %1572 = vsyncpa [#allocation9], 1 }
 0x2af   :  { %1573 = vsyncpa [#allocation4], 1 }

</bundles_post_ra>
